<compile_context>
chip_gen: v5e
topology: v5e:2x2
jax: 0.10.0
libtpu: 0.0.40
codegen_flags: <defaults>
</compile_context>

<pallas_src>
import functools

import jax
import jax.numpy as jnp
from jax import lax
from jax.experimental import pallas as pl
from jax.experimental.pallas import tpu as pltpu

_LANE = 128
_MIB = 1024 * 1024


def _vmem_capacity_bytes():
    try:
        return int(pltpu.get_tpu_info().vmem_capacity_bytes)
    except Exception:
        return 64 * _MIB  # conservative default (v7x physical VMEM)


def _vmem_limit(nbytes, capacity):
    lo = min(32 * _MIB, capacity // 2)
    hi = max(lo, capacity - 8 * _MIB)
    return int(min(hi, max(lo, nbytes)))


# ---------------------------------------------------------------------------
# Fused path: one grid step per batch element (pool -> MLP -> scale),
# single HBM read + single HBM write of x.
# ---------------------------------------------------------------------------
def _fca_fused_kernel(x_ref, w1_ref, w2_ref, o_ref, *, inv_hw):
    # x_ref/o_ref: (C, HW)   w1_ref: (R, C)   w2_ref: (C, R)
    x = x_ref[...]                                                  # native dtype

    # Global average pool: f32 accumulation, divisor is the true HW.
    pooled = jnp.sum(x, axis=-1, keepdims=True, dtype=jnp.float32) * inv_hw  # (C, 1)

    # Tiny squeeze-excite MLP in f32 (FLOPs negligible vs HBM traffic).
    y1 = jnp.dot(w1_ref[...].astype(jnp.float32), pooled,
                 preferred_element_type=jnp.float32)                # (R, 1)
    y1 = jnp.clip(y1, 0.0, 6.0)                                     # ReLU6
    y2 = jnp.dot(w2_ref[...].astype(jnp.float32), y1,
                 preferred_element_type=jnp.float32)                # (C, 1)
    scale = jax.nn.sigmoid(y2)                                      # (C, 1)

    # Channel-wise rescale in the input's native dtype (no full-tile upcast).
    o_ref[...] = x * scale.astype(x.dtype)


def _fca_fused(x_flat, w1, w2, capacity):
    B, C, HW = x_flat.shape
    R = w1.shape[0]
    itemsize = jnp.dtype(x_flat.dtype).itemsize
    slab = C * HW * itemsize
    w_bytes = (w1.size * jnp.dtype(w1.dtype).itemsize
               + w2.size * jnp.dtype(w2.dtype).itemsize)

    kernel = functools.partial(_fca_fused_kernel, inv_hw=1.0 / float(HW))
    cost = pl.CostEstimate(
        flops=int(2 * B * C * HW + 4 * B * C * R),
        transcendentals=int(B * C),
        bytes_accessed=int(2 * B * C * HW * itemsize + w_bytes),
    )
    # 2x in + 2x out double buffers, a potential f32 reduction temp, weights.
    budget = 4 * slab + 2 * C * HW * 4 + 2 * w_bytes + 2 * _MIB
    return pl.pallas_call(
        kernel,
        out_shape=jax.ShapeDtypeStruct((B, C, HW), x_flat.dtype),
        grid_spec=pltpu.PrefetchScalarGridSpec(
            num_scalar_prefetch=0,
            grid=(B,),
            in_specs=[
                pl.BlockSpec((pl.Squeezed(), C, HW), lambda b: (b, 0, 0)),
                pl.BlockSpec((R, C), lambda b: (0, 0)),
                pl.BlockSpec((C, R), lambda b: (0, 0)),
            ],
            out_specs=pl.BlockSpec((pl.Squeezed(), C, HW), lambda b: (b, 0, 0)),
        ),
        compiler_params=pltpu.CompilerParams(
            dimension_semantics=("parallel",),
            vmem_limit_bytes=_vmem_limit(budget, capacity),
        ),
        cost_estimate=cost,
    )(x_flat, w1, w2)


# ---------------------------------------------------------------------------
# Two-phase path: (pool + MLP) kernel, then a tiled elementwise scale kernel.
# Used when the per-batch slab does not fit the fused VMEM budget, or B == 1
# with a non-trivial slab (streaming/pipelining + second-core work).
# ---------------------------------------------------------------------------
def _fca_pool_mlp_kernel(x_ref, w1_ref, w2_ref, s_ref, acc_ref,
                         *, inv_hw, true_hw, hw_tile, ragged):
    # x_ref: (C, hw_tile); s_ref: (C, 1) in x dtype; acc_ref: (C, 1) f32.
    h = pl.program_id(1)

    @pl.when(h == 0)
    def _():
        acc_ref[...] = jnp.zeros_like(acc_ref)

    x = x_ref[...]
    if ragged:
        # Pallas does not zero out-of-bounds block lanes on reads: mask the
        # ragged HW tail so it does not bias the sum (mask is all-true for
        # non-final tiles; cheap VPU work).
        col = h * hw_tile + lax.broadcasted_iota(jnp.int32, x.shape, 1)
        x = jnp.where(col < true_hw, x, jnp.zeros_like(x))
    acc_ref[...] += jnp.sum(x, axis=-1, keepdims=True, dtype=jnp.float32)

    @pl.when(h == pl.num_programs(1) - 1)
    def _():
        pooled = acc_ref[...] * inv_hw                              # (C, 1) f32
        y1 = jnp.clip(jnp.dot(w1_ref[...].astype(jnp.float32), pooled,
                              preferred_element_type=jnp.float32), 0.0, 6.0)
        y2 = jnp.dot(w2_ref[...].astype(jnp.float32), y1,
                     preferred_element_type=jnp.float32)
        s_ref[...] = jax.nn.sigmoid(y2).astype(s_ref.dtype)


def _fca_scale_kernel(x_ref, s_ref, o_ref):
    # x_ref/o_ref: (C, hw_tile); s_ref: (C, 1).  Ragged-tail garbage reads are
    # harmless: the corresponding output lanes are masked on writeback.
    o_ref[...] = x_ref[...] * s_ref[...]


def _fca_two_phase(x_flat, w1, w2, hw_tile, capacity):
    B, C, HW = x_flat.shape
    R = w1.shape[0]
    itemsize = jnp.dtype(x_flat.dtype).itemsize
    n_hw = pl.cdiv(HW, hw_tile)
    blk = C * hw_tile * itemsize
    w_bytes = (w1.size * jnp.dtype(w1.dtype).itemsize
               + w2.size * jnp.dtype(w2.dtype).itemsize)
    ragged = (HW % hw_tile) != 0

    # Phase 1: global-sum pool with the MLP folded into the finalize step.
    pool_kernel = functools.partial(
        _fca_pool_mlp_kernel, inv_hw=1.0 / float(HW), true_hw=HW,
        hw_tile=hw_tile, ragged=ragged)
    pool_cost = pl.CostEstimate(
        flops=int(B * C * HW + 4 * B * C * R),
        transcendentals=int(B * C),
        bytes_accessed=int(B * C * HW * itemsize + B * C * itemsize + w_bytes),
    )
    scale = pl.pallas_call(
        pool_kernel,
        out_shape=jax.ShapeDtypeStruct((B, C, 1), x_flat.dtype),
        grid_spec=pltpu.PrefetchScalarGridSpec(
            num_scalar_prefetch=0,
            grid=(B, n_hw),
            in_specs=[
                pl.BlockSpec((pl.Squeezed(), C, hw_tile), lambda b, h: (b, 0, h)),
                pl.BlockSpec((R, C), lambda b, h: (0, 0)),
                pl.BlockSpec((C, R), lambda b, h: (0, 0)),
            ],
            out_specs=pl.BlockSpec((pl.Squeezed(), C, 1), lambda b, h: (b, 0, 0)),
            scratch_shapes=[pltpu.VMEM((C, 1), jnp.float32)],
        ),
        compiler_params=pltpu.CompilerParams(
            dimension_semantics=("parallel", "arbitrary"),
            vmem_limit_bytes=_vmem_limit(
                2 * blk + 2 * w_bytes + 8 * C * 4 + 2 * _MIB, capacity),
        ),
        cost_estimate=pool_cost,
    )(x_flat, w1, w2)

    # Phase 2: lane-dense elementwise rescale, fully parallel grid (both axes
    # parallel so the second TensorCore gets work even when B == 1).
    scale_cost = pl.CostEstimate(
        flops=int(B * C * HW),
        transcendentals=0,
        bytes_accessed=int(2 * B * C * HW * itemsize + B * C * itemsize),
    )
    out = pl.pallas_call(
        _fca_scale_kernel,
        out_shape=jax.ShapeDtypeStruct((B, C, HW), x_flat.dtype),
        grid_spec=pltpu.PrefetchScalarGridSpec(
            num_scalar_prefetch=0,
            grid=(B, n_hw),
            in_specs=[
                pl.BlockSpec((pl.Squeezed(), C, hw_tile), lambda b, h: (b, 0, h)),
                pl.BlockSpec((pl.Squeezed(), C, 1), lambda b, h: (b, 0, 0)),
            ],
            out_specs=pl.BlockSpec((pl.Squeezed(), C, hw_tile), lambda b, h: (b, 0, h)),
        ),
        compiler_params=pltpu.CompilerParams(
            dimension_semantics=("parallel", "parallel"),
            vmem_limit_bytes=_vmem_limit(
                4 * blk + 4 * C * itemsize + 2 * _MIB, capacity),
        ),
        cost_estimate=scale_cost,
    )(x_flat, scale)
    return out


# ---------------------------------------------------------------------------
# Public wrapper.
# ---------------------------------------------------------------------------
def fca_forward(x, w1, w2, *, force_two_phase=False, hw_tile=None):
    """x: (B, C, H, W) NCHW; w1: (R, C); w2: (C, R).  Returns (B, C, H, W)."""
    B, C, H, W = x.shape
    HW = H * W
    itemsize = jnp.dtype(x.dtype).itemsize
    x_flat = x.reshape(B, C, HW)     # contiguous reshape: free, no HBM copy

    capacity = _vmem_capacity_bytes()
    slab_bytes = C * HW * itemsize

    # Generation-aware fused-slab limit: ~capacity/6 leaves room for 2x-in +
    # 2x-out double buffers plus a potential f32 reduction temp.
    fused_limit = min(capacity // 6, 24 * _MIB)
    fused = (not force_two_phase) and slab_bytes <= fused_limit
    # B == 1 fused would be a single grid step (no DMA/compute overlap, one
    # TensorCore); prefer the streamed two-phase path once the slab matters.
    if fused and B == 1 and slab_bytes > 2 * _MIB:
        fused = False

    if fused:
        out_flat = _fca_fused(x_flat, w1, w2, capacity)
    else:
        if hw_tile is None:
            # ~2 MiB blocks on 64 MiB-VMEM parts (v7x), ~4 MiB otherwise;
            # trailing dim a multiple of 128 (lane dense) or the full HW.
            target = 2 * _MIB if capacity <= 64 * _MIB else 4 * _MIB
            hw_tile = max(_LANE, (target // max(1, C * itemsize)) // _LANE * _LANE)
        if hw_tile >= HW:
            hw_tile = HW            # full-extent trailing dim is always legal
        out_flat = _fca_two_phase(x_flat, w1, w2, hw_tile, capacity)

    return out_flat.reshape(B, C, H, W)


def _fca_reference(x, w1, w2):
    # Pure-JAX reference of the PyTorch forward.
    pooled = jnp.mean(x.astype(jnp.float32), axis=(2, 3))          # (B, C)
    y1 = jnp.clip(pooled @ w1.T.astype(jnp.float32), 0.0, 6.0)     # (B, R)
    y2 = jax.nn.sigmoid(y1 @ w2.T.astype(jnp.float32))             # (B, C)
    return (x.astype(jnp.float32) * y2[:, :, None, None]).astype(x.dtype)


if __name__ == "__main__":
    key = jax.random.PRNGKey(0)
    kx, k1, k2, kx2, kx3 = jax.random.split(key, 5)

    # Case 1: fused single-kernel path (B=2, C=4, 16x16, reduce=2).
    B, C, H, W, R = 2, 4, 16, 16, 2
    x = jax.random.normal(kx, (B, C, H, W), dtype=jnp.float32)
    w1 = jax.random.normal(k1, (R, C), dtype=jnp.float32) * 0.5    # Linear(C->R), (out, in)
    w2 = jax.random.normal(k2, (C, R), dtype=jnp.float32) * 0.5    # Linear(R->C), (out, in)
    ref = _fca_reference(x, w1, w2)

    out = fca_forward(x, w1, w2)
    jax.block_until_ready(out)
    assert out.shape == (B, C, H, W)
    assert jnp.allclose(out, ref, atol=1e-5, rtol=1e-5)

    # Case 2: two-phase (pool+MLP kernel, then scale kernel) on the same input.
    out2 = fca_forward(x, w1, w2, force_two_phase=True)
    jax.block_until_ready(out2)
    assert jnp.allclose(out2, ref, atol=1e-5, rtol=1e-5)

    # Case 3: HW not a multiple of 128 (7x7=49) on the fused path -> no pad,
    # masked final vreg store only.
    xb = jax.random.normal(kx2, (2, 8, 7, 7), dtype=jnp.float32)
    w1b = jax.random.normal(k1, (2, 8), dtype=jnp.float32) * 0.5
    w2b = jax.random.normal(k2, (8, 2), dtype=jnp.float32) * 0.5
    outb = fca_forward(xb, w1b, w2b)
    jax.block_until_ready(outb)
    assert jnp.allclose(outb, _fca_reference(xb, w1b, w2b), atol=1e-5, rtol=1e-5)

    # Case 4: B=1, ragged HW tail on the two-phase path (HW=200, hw_tile=128)
    # exercising the in-kernel tail masking of the pooled sum.
    xc = jax.random.normal(kx3, (1, 4, 10, 20), dtype=jnp.float32)
    outc = fca_forward(xc, w1, w2, force_two_phase=True, hw_tile=128)
    jax.block_until_ready(outc)
    assert jnp.allclose(outc, _fca_reference(xc, w1, w2), atol=1e-5, rtol=1e-5)

    print("KERNEL_OK")
</pallas_src>

<mosaic_0001>
module attributes {stable_mosaic.version = 11 : i64} {
  func.func @_fca_fused_kernel(%arg0: i32, %arg1: memref<1x4x256xf32, #tpu.memory_space<vmem>>, %arg2: memref<2x4xf32, #tpu.memory_space<vmem>>, %arg3: memref<4x2xf32, #tpu.memory_space<vmem>>, %arg4: memref<1x4x256xf32, #tpu.memory_space<vmem>>) attributes {dimension_semantics = [#tpu.dimension_semantics<parallel>], iteration_bounds = array<i64: 2>, scalar_prefetch = 0 : i64, scratch_operands = 0 : i64, tpu.core_type = #tpu.core_type<tc>, window_params = [{transform_indices = @transform_0, window_bounds = array<i64: 1, 4, 256>}, {pipeline_mode = #tpu.pipeline_mode<synchronous>, transform_indices = @transform_1, window_bounds = array<i64: 2, 4>}, {pipeline_mode = #tpu.pipeline_mode<synchronous>, transform_indices = @transform_2, window_bounds = array<i64: 4, 2>}, {transform_indices = @transform_3, window_bounds = array<i64: 1, 4, 256>}]} {
    %c0 = arith.constant 0 : index
    %c0_0 = arith.constant 0 : index
    %c0_1 = arith.constant 0 : index
    %0 = vector.load %arg1[%c0, %c0_0, %c0_1] : memref<1x4x256xf32, #tpu.memory_space<vmem>>, vector<1x4x256xf32>
    %1 = vector.shape_cast %0 : vector<1x4x256xf32> to vector<4x256xf32>
    %cst = arith.constant dense<0.000000e+00> : vector<4xf32>
    %2 = vector.multi_reduction <add>, %1, %cst [1] : vector<4x256xf32> to vector<4xf32>
    %3 = vector.shape_cast %2 : vector<4xf32> to vector<4x1xf32>
    %cst_2 = arith.constant 3.906250e-03 : f32
    %4 = vector.broadcast %cst_2 : f32 to vector<4x1xf32>
    %5 = arith.mulf %3, %4 : vector<4x1xf32>
    %c0_3 = arith.constant 0 : index
    %c0_4 = arith.constant 0 : index
    %6 = vector.load %arg2[%c0_3, %c0_4] : memref<2x4xf32, #tpu.memory_space<vmem>>, vector<2x4xf32>
    %cst_5 = arith.constant dense<0.000000e+00> : vector<2x1xf32>
    %7 = tpu.matmul %6, %5, %cst_5 {dimension_numbers = #tpu.dot_dimension_numbers<[1], [0], [0], [1], [0, 0, 1, 1], [], []>} : vector<2x4xf32>, vector<4x1xf32>, vector<2x1xf32> -> vector<2x1xf32>
    %cst_6 = arith.constant 0.000000e+00 : f32
    %cst_7 = arith.constant 6.000000e+00 : f32
    %8 = vector.broadcast %cst_6 : f32 to vector<2x1xf32>
    %9 = arith.maximumf %8, %7 : vector<2x1xf32>
    %10 = vector.broadcast %cst_7 : f32 to vector<2x1xf32>
    %11 = arith.minimumf %10, %9 : vector<2x1xf32>
    %c0_8 = arith.constant 0 : index
    %c0_9 = arith.constant 0 : index
    %12 = vector.load %arg3[%c0_8, %c0_9] : memref<4x2xf32, #tpu.memory_space<vmem>>, vector<4x2xf32>
    %cst_10 = arith.constant dense<0.000000e+00> : vector<4x1xf32>
    %13 = tpu.matmul %12, %11, %cst_10 {dimension_numbers = #tpu.dot_dimension_numbers<[1], [0], [0], [1], [0, 0, 1, 1], [], []>} : vector<4x2xf32>, vector<2x1xf32>, vector<4x1xf32> -> vector<4x1xf32>
    %14 = arith.negf %13 : vector<4x1xf32>
    %15 = math.exp %14 : vector<4x1xf32>
    %cst_11 = arith.constant 1.000000e+00 : f32
    %16 = vector.broadcast %cst_11 : f32 to vector<4x1xf32>
    %17 = arith.addf %16, %15 : vector<4x1xf32>
    %18 = arith.divf %16, %17 : vector<4x1xf32>
    %19 = vector.broadcast %18 : vector<4x1xf32> to vector<4x256xf32>
    %20 = arith.mulf %1, %19 : vector<4x256xf32>
    %c0_12 = arith.constant 0 : index
    %c0_13 = arith.constant 0 : index
    %c0_14 = arith.constant 0 : index
    %21 = vector.load %arg4[%c0_12, %c0_13, %c0_14] : memref<1x4x256xf32, #tpu.memory_space<vmem>>, vector<1x4x256xf32>
    %22 = vector.shape_cast %21 : vector<1x4x256xf32> to vector<4x256xf32>
    %23 = vector.shape_cast %20 : vector<4x256xf32> to vector<1x4x256xf32>
    tpu.vector_store %arg4[%c0_12, %c0_13, %c0_14], %23 {strides = array<i32>} : memref<1x4x256xf32, #tpu.memory_space<vmem>>, vector<1x4x256xf32>,
    return
  }
  func.func @transform_0(%arg0: i32) -> (i32, i32, i32) {
    %c0_i32 = arith.constant 0 : i32
    %c0_i32_0 = arith.constant 0 : i32
    %c0_i32_1 = arith.constant 0 : i32
    return %arg0, %c0_i32, %c0_i32_0 : i32, i32, i32
  }
  func.func @transform_1(%arg0: i32) -> (i32, i32) {
    %c0_i32 = arith.constant 0 : i32
    %c0_i32_0 = arith.constant 0 : i32
    %c0_i32_1 = arith.constant 0 : i32
    return %c0_i32, %c0_i32_0 : i32, i32
  }
  func.func @transform_2(%arg0: i32) -> (i32, i32) {
    %c0_i32 = arith.constant 0 : i32
    %c0_i32_0 = arith.constant 0 : i32
    %c0_i32_1 = arith.constant 0 : i32
    return %c0_i32, %c0_i32_0 : i32, i32
  }
  func.func @transform_3(%arg0: i32) -> (i32, i32, i32) {
    %c0_i32 = arith.constant 0 : i32
    %c0_i32_0 = arith.constant 0 : i32
    %c0_i32_1 = arith.constant 0 : i32
    return %arg0, %c0_i32, %c0_i32_0 : i32, i32, i32
  }
}

</mosaic_0001>

<bundles_post_ra>
// kernel: tpu_custom_call.1
= control target key start
LH: loop header
LB: loop body
LE: loop exit
PB: predicated region body
PF: predicated region fallthrough
CT: control target
= control target key end

     0   :  { %8 = vsyncpa [#allocation3], 0  ;;  %s710_s0 = inlined_call_operand.hbm [shape: f32[2,4,256], index: 0, kind: input, shape index: {}]   ;;  %s711_s1 = inlined_call_operand.vmem [shape: f32[2,4], index: 1, kind: input, shape index: {}]   ;;  %s712_s2 = inlined_call_operand.vmem [shape: f32[4,2], index: 2, kind: input, shape index: {}]   ;;  %s713_s3 = inlined_call_operand.hbm [shape: f32[2,4,256], index: 3, kind: output, shape index: {}]  }
   0x1   :  { %10 = vsyncpa [#allocation3 + $0x1], 0 }
   0x2   :  { %11 = vsyncpa [#allocation4], 0 }
   0x3   :  { %13 = vsyncpa [#allocation4 + $0x1], 0  ;;  %s573_s12 = smov 0   ;;  %s575_s13 = smov 0  }
   0x4   :  { %s577_s14 = smov 0   ;;  %s579_s15 = smov 0  }
   0x5 LB: > { %s594_s16 = sadd.s32 4294967295, %s549_s15   ;;  %s379_s17 = sadd.s32 4294967294, %s549_s15   ;;  %s549_s15 = sphi %s579_s15, %s723_s15   ;;  %s545_s14 = sphi %s577_s14, %s722_s14   ;;  %s541_s13 = sphi %s575_s13, %s721_s13   ;;  %s537_s12 = sphi %s573_s12, %s720_s12  }
   0x6   : > { %s598_s18 = sadd.s32 1, %s549_s15   ;;  %s26_s19 = sadd.s32 1, %s545_s14 }
   0x7   : > { %s23_s20 = ssub.s32 %s549_s15, %s598_s18  ;;  %p33_p0 = scmp.ne.s32.totalorder %s545_s14, %s541_s13 }
   0x8   : > { %p24_p1 = scmp.eq.s32.totalorder %s23_s20, 0  ;;  %p34_p2 = scmp.eq.s32.totalorder %s549_s15, 0 }
   0x9   : > { %p39_p3 = scmp.ne.s32.totalorder %s541_s13, %s537_s12  ;;  %p40_p4 = scmp.eq.s32.totalorder %s594_s16, 0 }
   0xa   : > { %s610_s21 = scalar_select %p24_p1, %s545_s14, %s26_s19  }
   0xb   : > { %p612_p5 = por %p34_p2, %p33_p0  ;;  %p616_p6 = por %p40_p4, %p39_p3 }
   0xc   : > { %p105_p7 = scmp.eq.s32.totalorder %s594_s16, 1  ;;  %p111_p8 = scmp.eq.s32.totalorder %s379_s17, 1 }
   0xd   : > { %p412_p10 = scmp.lt.s32.totalorder %s549_s15, 2  ;;  %s137_s26 = sand.u32 1, %s545_s14  }
   0xe   : > { %p623_p11 = por %p105_p7, %p33_p0  ;;  %p627_p12 = por %p111_p8, %p39_p3 }
   0xf   : > { %s398_s27 = sshll.u32 %s549_s15, 3  ;;  %s382_s28 = sshll.u32 %s137_s26, 3 }
  0x10   : > { %s146_s4 = scalar_lea.hbm %s710_s0, %s398_s27  ;;  %s141_s6 = scalar_lea.vmem [#allocation2], %s382_s28 }
  0x11   : > { %s148_s5 = sshll.u32 %s146_s4, 4  ;;  %s150_s7 = sshll.u32 %s141_s6, 4  ;;  %s149_s5 = int_to_ptr.hbm [resolvable:$true] %s148_s5  ;;  %s151_s7 = int_to_ptr.vmem [resolvable:$true] %s150_s7 }
  0x12   : > { %p638_p13 = pnand %p412_p10, %p612_p5  ;;  %p385_p0 = scmp.ge.s32.totalorder %s549_s15, 1 }
  0x13   : > { %p155_p1 = scmp.lt.s32.totalorder %s549_s15, 3  ;;  %s138_s9 = scalar_lea.sflag [#allocation3], %s137_s26 }
  0x14   : > { %s453_s10 = sshra.s32 %s149_s5, 4  ;;  %p457_p3 = pneg %p638_p13  ;;  %s454_s10 = int_to_ptr.hbm [resolvable:$true] %s453_s10 }
  0x15   : > { %s455_s11 = scalar_lea.hbm %s454_s10, 8  ;;  %s460_s20 = scalar_lea.hbm %s710_s0, 16 }
  0x16   : > { %p456_p2 = scmp.ne.s32.totalorder %s454_s10, %s455_s11  ;;  %p461_p5 = scmp.lt.s32.totalorder %s454_s10, %s710_s0 }
  0x17   : > { %p462_p8 = scmp.lt.s32.totalorder %s460_s20, %s455_s11 }
  0x18   : > { %p458_p4 = pnand %p457_p3, %p456_p2 }
  0x19   : > { %p463_p10 = por %p462_p8, %p461_p5 }
  0x1a   : > { %p459_p7 = pneg %p458_p4 }
  0x1c   : > { %p464_p9 = pnand %p463_p10, %p459_p7 }
  0x1e   : > { %467 = shalt.err (!%p464_p9)
}
  0x1f   : > { %407 = dma.hbm_to_vmem [thread:$0]  (!%p638_p13), %s149_s5, 128, %s151_s7, %s138_s9  }
  0x20   : > { %p156_p2 = pnand %p385_p0, %p155_p1 }
  0x21   : > { %s659_s26 = sand.u32 (!%p156_p2), 1, %s541_s13  }
  0x22   : > { %159 = sbr.rel (%p156_p2) target bundleno = 578 (0x242), region = 32  ;;  %s386_s28 = sshll.u32 (!%p156_p2), %s659_s26, 3 }
  0x23   : > { %s162_s29 = scalar_lea.sflag (!%p156_p2), [#allocation3], %s659_s26  ;;  %s165_s30 = scalar_lea.vmem (!%p156_p2), [#allocation2], %s386_s28 }
  0x27   : > { %528 = dma.done.wait (%p616_p6), %s162_s29, 128  }
  0x28   : > { %530 = vsyncadd (%p616_p6), %s162_s29, 4294967168  ;;  %v189_v0 = vld [vmem:[%s165_s30] sm:$0xff]  ;;  %vm196_vm0 = vcmask 1043456   ;;  %v203_v8 = vld [vmem:[%s711_s1] sm:$0x3]  ;;  %vm204_vm1 = vcmask 31744  }
  0x29   : > { %191 = vst [vmem:[#allocation1] ss:$2 sm:$0xff] %v189_v0  ;;  %vm238_vm2 = vcmask 1041408   ;;  %v233_v12 = vld [vmem:[%s712_s2] sm:$0xf]  ;;  %vm234_vm3 = vcmask 15360  }
  0x2a   : > { %v551_v13 = vmov 0   ;;  %v552_v28 = vmov 839922192   ;;  %s399_s7 = sshll.u32 %s594_s16, 3  ;;  %s188_s11 = scalar_lea.vmem [#allocation5], %s386_s28 }
  0x2b   : > { %448 = vset.pattern.permute.xlu0 %v551_v13  ;;  %v286_v29 = vunpack.c.l.s4 %v552_v28  ;;  %s304_s10 = scalar_lea.hbm %s713_s3, %s399_s7  ;;  %s306_s17 = sshll.u32 %s188_s11, 4  ;;  %s307_s17 = int_to_ptr.vmem [resolvable:$true] %s306_s17 }
  0x2c   : > { %s308_s19 = sshll.u32 %s304_s10, 4  ;;  %s293_s20 = scalar_lea.sflag [#allocation4], %s659_s26  ;;  %s309_s19 = int_to_ptr.hbm [resolvable:$true] %s308_s19 }
  0x2d   : > { %v287_v30 = vunpack.c.0.s8 %v286_v29  ;;  %s497_s22 = sshra.s32 %s309_s19, 4  ;;  %s503_s30 = scalar_lea.hbm %s713_s3, 16  ;;  %s498_s22 = int_to_ptr.hbm [resolvable:$true] %s497_s22 }
  0x2e   : > { %s499_s16 = scalar_lea.hbm %s498_s22, 8  ;;  %p504_p0 = scmp.lt.s32.totalorder %s498_s22, %s713_s3 }
  0x2f   : > { %p500_p6 = scmp.ne.s32.totalorder %s498_s22, %s499_s16  ;;  %p505_p1 = scmp.lt.s32.totalorder %s503_s30, %s499_s16 }
  0x30   : > { %v192_v1 = vld.sshfl [vmem:[#allocation1] sm:$0xff pattern:$0x75316420]  ;;  %v193_v2 = vld.sshfl [vmem:[#allocation1 + $0x8] sm:$0xff pattern:$0x75316420] }
  0x31   : > { %v197_v3 = vsel %vm196_vm0, %v192_v1, 0.0  ;;  %v198_v4 = vsel %vm196_vm0, %v193_v2, 0.0  ;;  %p501_p9 = pnand %p500_p6, %p623_p11  ;;  %p506_p3 = por %p505_p1, %p504_p0 }
  0x32   : > { %v199_v5 = vadd.f32 %v198_v4, %v197_v3 }
  0x33   : > { %p502_p13 = pneg %p501_p9 }
  0x34   : > { %200 = vadd.xlane.f32.xlu0 %v199_v5 }
  0x35   : > { %p507_p4 = pnand %p506_p3, %p502_p13 }
  0xa7   : > { %v201_v6 = vpop.xlane.xlu0 %200 }
  0xa8   : > { %v202_v7 = vmul.f32 0.00390625, %v201_v6 }
  0xaa   : > { %388 = vmatpush.msk.msra.mxu0 %vm196_vm0, %v202_v7 }
  0xab   : > { %389 = vmatmul.msk.f32.vlgmr.msra.gmra.mxu0 %vm204_vm1, %v203_v8 }
 0x128   : > { %v228_v9 = vpop.f32.mrf.mxu0 }
 0x129   : > { %v231_v10 = vmax.f32 %v228_v9, 0.0 }
 0x12b   : > { %v232_v11 = vmin.f32 %v231_v10, 6.0 }
 0x12d   : > { %390 = vmatpush.msk.msra.mxu1 %vm238_vm2, %v232_v11 }
 0x12e   : > { %391 = vmatmul.msk.f32.vlgmr.msra.gmra.mxu1 %vm234_vm3, %v233_v12 }
 0x1ab   : > { %v259_v14 = vpop.f32.mrf.mxu1 }
 0x1ac   : > { %v392_v15 = vmul.f32 -1.442695, %v259_v14 }
 0x1ae   : > { %449 = vpow2.f32 %v392_v15 }
 0x1b4   : > { %v450_v16 = vpop.eup %449 }
 0x1b5   : > { %v265_v17 = vadd.f32 1.0, %v450_v16 }
 0x1b7   : > { %451 = vrcp.f32 %v265_v17  ;;  %v277_v21 = vand.u32 2147483648, %v265_v17  ;;  %v275_v23 = vand.u32 2147483647, %v265_v17  ;;  %vm271_vm5 = vweird.f32 %v265_v17 }
 0x1b9   : > { %v278_v25 = vor.u32 1.1754944e-38, %v277_v21  ;;  %vm276_vm7 = vcmp.eq.f32.partialorder %v275_v23, 8.507059e+37 }
 0x1bd   : > { %v452_v18 = vpop.eup %451 }
 0x1be   : > { %v267_v19 = vmul.f32 %v452_v18, %v265_v17  ;;  %vm272_vm4 = vweird.f32 %v452_v18 }
 0x1bf   : > { %vm273_vm6 = vmor %vm271_vm5, %vm272_vm4 }
 0x1c0   : > { %v268_v20 = vsub.f32 1.0, %v267_v19 }
 0x1c2   : > { %v269_v22 = vmul.f32 %v452_v18, %v268_v20 }
 0x1c4   : > { %v270_v24 = vadd.f32 %v452_v18, %v269_v22 }
 0x1c6   : > { %v274_v26 = vsel %vm273_vm6, %v452_v18, %v270_v24 }
 0x1c7   : > { %v279_v27 = vsel %vm276_vm7, %v278_v25, %v274_v26 }
 0x1c8   : > { %283 = vperm.xlu0 %448, %v279_v27  }
 0x23a   : > { %v284_v31 = vpop.permute.xlu0 %283 }
 0x23b   : > { %v288_v32 = vperm.slane %v284_v31, %v287_v30 }
 0x23d   : > { %v290_v33 = vmul.f32 %v288_v32, %v189_v0 }
 0x23f   : > { %291 = vst [vmem:[%s188_s11] sm:$0xff] %v290_v33 }
 0x240   : > { %510 = shalt.err (!%p507_p4)
}
 0x241   : > { %402 = dma.vmem_to_hbm [thread:$0]  (%p623_p11), %s307_s17, 128, %s309_s19, %s293_s20  }
 0x242 PF: > { %s320_s26 = sand.u32 1, %s537_s12   ;;  %p719_p7 = scmp.ge.s32.totalorder %s549_s15, 2 }
 0x243   : > { %s321_s5 = scalar_lea.sflag [#allocation4], %s320_s26 }
 0x244   : > { %p409_p5 = pnand %p719_p7, %p627_p12 }
 0x246   : > { %p410_p8 = pneg %p409_p5 }
 0x248   : > { %532 = dma.done.wait (%p410_p8), %s321_s5, 128  }
 0x249   : > { %534 = vsyncadd (%p410_p8), %s321_s5, 4294967168  ;;  %p16_p10 = scmp.ge.s32.totalorder %s598_s18, 4   ;;  %s720_s12 = smov %s541_s13 }
 0x24a   : > { %s721_s13 = smov %s545_s14  ;;  %s722_s14 = smov %s610_s21 }
 0x24b   : > { %s723_s15 = smov %s598_s18  ;;  %18 = sbr.rel (!%p16_p10) target bundleno = 5 (0x5), region = 77 }
 0x250   :  { %327 = vsyncpa [#allocation3], 1 }
 0x251   :  { %329 = vsyncpa [#allocation3 + $0x1], 1 }
 0x252   :  { %330 = vsyncpa [#allocation4], 1 }
 0x253   :  { %332 = vsyncpa [#allocation4 + $0x1], 1 }

</bundles_post_ra>
